<compile_context>
chip_gen: v7x
topology: tpu7x:2x2x1
jax: 0.10.0
libtpu: 0.0.40
codegen_flags: <defaults>
</compile_context>

<pallas_src>
import math

import jax
import jax.numpy as jnp
from jax.experimental import pallas as pl
from jax.experimental.pallas import tpu as pltpu


def _feature_attn_pool_kernel(qblk_ref, expand_ref, sumblk_ref, x_ref, out_ref):
    # qblk_ref:   (Fm1*D, Fm1)   block-diagonal scaled query (q/sqrt(D) per feature)
    # expand_ref: (Fm1, Fm1*D)   expands per-feature weight to per-(feature,channel)
    # sumblk_ref: (Fm1*D, D)     sums the Fm1 channel blocks back to D
    # x_ref:      (tb, Fm1*D)    lane-dense tile of feature tokens (native dtype)
    # out_ref:    (tb, D+Fm1)    fused output: pooled | weights
    x = x_ref[...]                                               # (tb, Fm1*D)

    # scores[b, f] = sum_d x[b, f*D+d] * q[d] / sqrt(D)          (MXU, native dtype)
    scores = jnp.dot(x, qblk_ref[...],
                     preferred_element_type=jnp.float32)         # (tb, Fm1) f32

    # numerically stable softmax over the feature axis (f32)
    m = jnp.max(scores, axis=-1, keepdims=True)                  # (tb, 1)
    e = jnp.exp(scores - m)                                      # (tb, Fm1)
    denom = jnp.sum(e, axis=-1, keepdims=True)                   # (tb, 1)
    w = e * pl.reciprocal(denom, approx=False)                   # (tb, Fm1) f32

    # w_exp[b, f*D+d] = w[b, f]                                  (MXU, tiny K, f32)
    w_exp = jnp.dot(w, expand_ref[...],
                    preferred_element_type=jnp.float32)          # (tb, Fm1*D) f32

    # pooled[b, d] = sum_f w[b, f] * x[b, f*D+d]
    #   elementwise product in f32, block-sum contraction on the MXU
    prod = w_exp * x.astype(jnp.float32)                         # (tb, Fm1*D) f32
    pooled = jnp.dot(prod.astype(sumblk_ref.dtype), sumblk_ref[...],
                     preferred_element_type=jnp.float32)         # (tb, D) f32

    fused = jnp.concatenate([pooled, w], axis=-1)                # (tb, D+Fm1)
    out_ref[...] = fused.astype(out_ref.dtype)


def _num_tensorcores() -> int:
    """Best-effort count of TensorCores per device (1 on v5e/v6e, 2 on v7x).

    Degrades gracefully to 1 if the attribute is unavailable."""
    try:
        dev = jax.devices()[0]
        n = getattr(dev, "num_cores", None)
        if n is None:
            n = getattr(dev, "core_count", 1)
        return max(1, int(n))
    except Exception:
        return 1


def _round_up8(x: int) -> int:
    return ((x + 7) // 8) * 8


def _pick_tile(b_t: int, requested: int, n_cores: int) -> int:
    """Tile over the batch*time axis: multiple of 8, maximal on single-TC chips,
    and (on multi-TC chips) chosen so the grid step count is a multiple of the
    core count for even sharding of the 'parallel' axis."""
    tb = min(requested, b_t)
    tb = max(8, (tb // 8) * 8)
    if n_cores > 1 and b_t >= 8 * n_cores:
        steps = max(n_cores, -(-b_t // tb))
        if steps % n_cores:
            steps += n_cores - (steps % n_cores)
        tb = max(8, _round_up8(-(-b_t // steps)))
    return tb


def feature_attention_pool(feat_tokens: jax.Array, query: jax.Array, *,
                           tb: int = 2048, num_tensorcores: int | None = None):
    """feat_tokens: [B_T, Fm1, D]; query: learned query, any shape with D elems.

    Returns (pooled [B_T, D], weights [B_T, Fm1]).
    Note: for bf16 inputs the returned weights are bf16 (reduced precision vs
    an f32 reference), matching the input dtype as in the previous version.
    """
    B_T, Fm1, D = feat_tokens.shape
    out_dtype = feat_tokens.dtype
    # Matmul operand dtype: native bf16 MXU when the input is bf16, else f32.
    mx_dtype = jnp.bfloat16 if feat_tokens.dtype == jnp.bfloat16 else jnp.float32

    q = query.reshape(-1).astype(jnp.float32)
    assert q.shape[0] == D, "query must have d_model elements"
    q_scaled = q / math.sqrt(D)

    # Tiny constant matrices (built once on the host side of the call):
    #   q_blk[f*D+d, f'] = (f == f') * q[d]/sqrt(D)
    #   expand[f, f'*D+d] = (f == f')
    #   sum_blk[f*D+d, d'] = (d == d')
    eye_f = jnp.eye(Fm1, dtype=jnp.float32)
    q_blk = jnp.kron(eye_f, q_scaled[:, None]).astype(mx_dtype)    # (Fm1*D, Fm1)
    expand = jnp.kron(eye_f, jnp.ones((1, D), jnp.float32))        # (Fm1, Fm1*D)
    sum_blk = jnp.kron(jnp.ones((Fm1, 1), jnp.float32),
                       jnp.eye(D, dtype=jnp.float32)).astype(mx_dtype)  # (Fm1*D, D)

    # Lane-dense input view: (B_T, Fm1*D); contiguous row-major => free reshape.
    x_flat = feat_tokens.reshape(B_T, Fm1 * D)
    FD = Fm1 * D
    Dout = D + Fm1

    n_cores = num_tensorcores if num_tensorcores is not None else _num_tensorcores()
    tile = _pick_tile(B_T, tb, n_cores)
    grid = (pl.cdiv(B_T, tile),)   # no host-side padding: ragged last block is masked

    fused = pl.pallas_call(
        _feature_attn_pool_kernel,
        out_shape=jax.ShapeDtypeStruct((B_T, Dout), out_dtype),
        grid_spec=pltpu.PrefetchScalarGridSpec(
            num_scalar_prefetch=0,
            grid=grid,
            in_specs=[
                pl.BlockSpec((FD, Fm1), lambda i: (0, 0)),    # q_blk (resident)
                pl.BlockSpec((Fm1, FD), lambda i: (0, 0)),    # expand (resident)
                pl.BlockSpec((FD, D), lambda i: (0, 0)),      # sum_blk (resident)
                pl.BlockSpec((tile, FD), lambda i: (i, 0)),   # feature-token tile
            ],
            out_specs=pl.BlockSpec((tile, Dout), lambda i: (i, 0)),  # fused out
        ),
        compiler_params=pltpu.CompilerParams(
            dimension_semantics=("parallel",),
            vmem_limit_bytes=32 * 1024 * 1024,   # safe on v5e/v6e/v7x; fits tb=2048
        ),
    )(q_blk, expand, sum_blk, x_flat)

    pooled = fused[:, :D]
    weights = fused[:, D:]
    return pooled, weights


def _reference(feat_tokens, query):
    B_T, Fm1, D = feat_tokens.shape
    q = query.reshape(D)
    scores = jnp.einsum("d,bfd->bf", q, feat_tokens) / math.sqrt(D)
    w = jax.nn.softmax(scores, axis=-1)
    pooled = jnp.einsum("bf,bfd->bd", w, feat_tokens)
    return pooled, w


if __name__ == "__main__":
    # Small shapes consistent with the module: B=8, T=8 -> B_T=64, Fm1=8, d_model=32.
    B, T, Fm1, D = 8, 8, 8, 32
    B_T = B * T

    key = jax.random.PRNGKey(0)
    k_x, k_q, k_x2 = jax.random.split(key, 3)
    feat_tokens = jax.random.normal(k_x, (B_T, Fm1, D), dtype=jnp.float32)
    # nn.Parameter(torch.randn(1, 1, d_model)) analogue.
    query = jax.random.normal(k_q, (1, 1, D), dtype=jnp.float32)

    pooled, weights = feature_attention_pool(feat_tokens, query)
    pooled = jax.block_until_ready(pooled)
    weights = jax.block_until_ready(weights)

    ref_pooled, ref_w = _reference(feat_tokens, query)
    assert pooled.shape == (B_T, D) and weights.shape == (B_T, Fm1)
    assert jnp.allclose(pooled, ref_pooled, atol=1e-4, rtol=1e-4), \
        float(jnp.max(jnp.abs(pooled - ref_pooled)))
    assert jnp.allclose(weights, ref_w, atol=1e-4, rtol=1e-4), \
        float(jnp.max(jnp.abs(weights - ref_w)))

    # Ragged-batch case (B_T not a multiple of the tile): exercises the
    # no-padding path with a masked last block.
    B_T2 = 50
    feat_tokens2 = jax.random.normal(k_x2, (B_T2, Fm1, D), dtype=jnp.float32)
    pooled2, weights2 = feature_attention_pool(feat_tokens2, query, tb=48)
    pooled2 = jax.block_until_ready(pooled2)
    weights2 = jax.block_until_ready(weights2)
    ref_pooled2, ref_w2 = _reference(feat_tokens2, query)
    assert pooled2.shape == (B_T2, D) and weights2.shape == (B_T2, Fm1)
    assert jnp.allclose(pooled2, ref_pooled2, atol=1e-4, rtol=1e-4), \
        float(jnp.max(jnp.abs(pooled2 - ref_pooled2)))
    assert jnp.allclose(weights2, ref_w2, atol=1e-4, rtol=1e-4), \
        float(jnp.max(jnp.abs(weights2 - ref_w2)))

    print("KERNEL_OK")
</pallas_src>

<mosaic_0001>
module attributes {stable_mosaic.version = 11 : i64} {
  func.func @_feature_attn_pool_kernel(%arg0: i32, %arg1: memref<256x8xf32, #tpu.memory_space<vmem>>, %arg2: memref<8x256xf32, #tpu.memory_space<vmem>>, %arg3: memref<256x32xf32, #tpu.memory_space<vmem>>, %arg4: memref<64x256xf32, #tpu.memory_space<vmem>>, %arg5: memref<64x40xf32, #tpu.memory_space<vmem>>) attributes {dimension_semantics = [#tpu.dimension_semantics<parallel>], iteration_bounds = array<i64: 1>, scalar_prefetch = 0 : i64, scratch_operands = 0 : i64, tpu.core_type = #tpu.core_type<tc>, window_params = [{pipeline_mode = #tpu.pipeline_mode<synchronous>, transform_indices = @transform_0, window_bounds = array<i64: 256, 8>}, {pipeline_mode = #tpu.pipeline_mode<synchronous>, transform_indices = @transform_1, window_bounds = array<i64: 8, 256>}, {pipeline_mode = #tpu.pipeline_mode<synchronous>, transform_indices = @transform_2, window_bounds = array<i64: 256, 32>}, {transform_indices = @transform_3, window_bounds = array<i64: 64, 256>}, {transform_indices = @transform_4, window_bounds = array<i64: 64, 40>}]} {
    %c0 = arith.constant 0 : index
    %c0_0 = arith.constant 0 : index
    %0 = vector.load %arg4[%c0, %c0_0] : memref<64x256xf32, #tpu.memory_space<vmem>>, vector<64x256xf32>
    %c0_1 = arith.constant 0 : index
    %c0_2 = arith.constant 0 : index
    %1 = vector.load %arg1[%c0_1, %c0_2] : memref<256x8xf32, #tpu.memory_space<vmem>>, vector<256x8xf32>
    %cst = arith.constant dense<0.000000e+00> : vector<64x8xf32>
    %2 = tpu.matmul %0, %1, %cst {dimension_numbers = #tpu.dot_dimension_numbers<[1], [0], [0], [1], [0, 0, 1, 1], [], []>} : vector<64x256xf32>, vector<256x8xf32>, vector<64x8xf32> -> vector<64x8xf32>
    %cst_3 = arith.constant dense<0xFF800000> : vector<64xf32>
    %3 = vector.multi_reduction <maximumf>, %2, %cst_3 [1] : vector<64x8xf32> to vector<64xf32>
    %4 = vector.shape_cast %3 : vector<64xf32> to vector<64x1xf32>
    %5 = vector.broadcast %4 : vector<64x1xf32> to vector<64x8xf32>
    %6 = arith.subf %2, %5 : vector<64x8xf32>
    %7 = math.exp %6 : vector<64x8xf32>
    %cst_4 = arith.constant dense<0.000000e+00> : vector<64xf32>
    %8 = vector.multi_reduction <add>, %7, %cst_4 [1] : vector<64x8xf32> to vector<64xf32>
    %9 = vector.shape_cast %8 : vector<64xf32> to vector<64x1xf32>
    %10 = tpu.reciprocal %9 : vector<64x1xf32> -> vector<64x1xf32>
    %11 = vector.broadcast %10 : vector<64x1xf32> to vector<64x8xf32>
    %12 = arith.mulf %7, %11 : vector<64x8xf32>
    %c0_5 = arith.constant 0 : index
    %c0_6 = arith.constant 0 : index
    %13 = vector.load %arg2[%c0_5, %c0_6] : memref<8x256xf32, #tpu.memory_space<vmem>>, vector<8x256xf32>
    %cst_7 = arith.constant dense<0.000000e+00> : vector<64x256xf32>
    %14 = tpu.matmul %12, %13, %cst_7 {dimension_numbers = #tpu.dot_dimension_numbers<[1], [0], [0], [1], [0, 0, 1, 1], [], []>} : vector<64x8xf32>, vector<8x256xf32>, vector<64x256xf32> -> vector<64x256xf32>
    %15 = arith.mulf %14, %0 : vector<64x256xf32>
    %c0_8 = arith.constant 0 : index
    %c0_9 = arith.constant 0 : index
    %16 = vector.load %arg3[%c0_8, %c0_9] : memref<256x32xf32, #tpu.memory_space<vmem>>, vector<256x32xf32>
    %cst_10 = arith.constant dense<0.000000e+00> : vector<64x32xf32>
    %17 = tpu.matmul %15, %16, %cst_10 {dimension_numbers = #tpu.dot_dimension_numbers<[1], [0], [0], [1], [0, 0, 1, 1], [], []>} : vector<64x256xf32>, vector<256x32xf32>, vector<64x32xf32> -> vector<64x32xf32>
    %18 = tpu.concatenate %17, %12 in 1 : vector<64x32xf32>, vector<64x8xf32> -> vector<64x40xf32>
    %c0_11 = arith.constant 0 : index
    %c0_12 = arith.constant 0 : index
    %19 = vector.load %arg5[%c0_11, %c0_12] : memref<64x40xf32, #tpu.memory_space<vmem>>, vector<64x40xf32>
    tpu.vector_store %arg5[%c0_11, %c0_12], %18 {strides = array<i32>} : memref<64x40xf32, #tpu.memory_space<vmem>>, vector<64x40xf32>,
    return
  }
  func.func @transform_0(%arg0: i32) -> (i32, i32) {
    %c0_i32 = arith.constant 0 : i32
    %c0_i32_0 = arith.constant 0 : i32
    %c0_i32_1 = arith.constant 0 : i32
    return %c0_i32, %c0_i32_0 : i32, i32
  }
  func.func @transform_1(%arg0: i32) -> (i32, i32) {
    %c0_i32 = arith.constant 0 : i32
    %c0_i32_0 = arith.constant 0 : i32
    %c0_i32_1 = arith.constant 0 : i32
    return %c0_i32, %c0_i32_0 : i32, i32
  }
  func.func @transform_2(%arg0: i32) -> (i32, i32) {
    %c0_i32 = arith.constant 0 : i32
    %c0_i32_0 = arith.constant 0 : i32
    %c0_i32_1 = arith.constant 0 : i32
    return %c0_i32, %c0_i32_0 : i32, i32
  }
  func.func @transform_3(%arg0: i32) -> (i32, i32) {
    %c0_i32 = arith.constant 0 : i32
    %c0_i32_0 = arith.constant 0 : i32
    return %arg0, %c0_i32 : i32, i32
  }
  func.func @transform_4(%arg0: i32) -> (i32, i32) {
    %c0_i32 = arith.constant 0 : i32
    %c0_i32_0 = arith.constant 0 : i32
    return %arg0, %c0_i32 : i32, i32
  }
}

</mosaic_0001>

<bundles_post_ra>
// kernel: tpu_custom_call.1
= control target key start
LH: loop header
LB: loop body
LE: loop exit
PB: predicated region body
PF: predicated region fallthrough
CT: control target
= control target key end

     0   :  { %vm170_vm0 = vcmask 64512   ;;  %vm575_vm1 = vcmask 261120   ;;  %vm584_vm2 = vcmask 326656   ;;  %s1244_s0 = inlined_call_operand.vmem [shape: f32[256,8], index: 0, kind: input, shape index: {}]   ;;  %s1245_s3 = inlined_call_operand.vmem [shape: f32[64,256], index: 3, kind: input, shape index: {}]   ;;  %s1246_s1 = inlined_call_operand.vmem [shape: f32[8,256], index: 1, kind: input, shape index: {}]   ;;  %s1247_s2 = inlined_call_operand.vmem [shape: f32[256,32], index: 2, kind: input, shape index: {}]   ;;  %s1248_s4 = inlined_call_operand.vmem [shape: f32[64,40], index: 4, kind: output, shape index: {}]  }
   0x1   :  { %v49_v0 = vld [vmem:[%s1244_s0 + $0x80] sm:$0xff]  ;;  %v50_v1 = vld [vmem:[%s1244_s0 + $0x88] sm:$0xff]  ;;  %v51_v5 = vld [vmem:[%s1244_s0 + $0x90] sm:$0xff] }
   0x2   :  { %v33_v2 = vld [vmem:[%s1244_s0] sm:$0xff]  ;;  %v717_v3 = vpack.c.bf16 %v50_v1, %v49_v0  ;;  %v34_v4 = vld [vmem:[%s1244_s0 + $0x8] sm:$0xff]  ;;  %v52_v6 = vld [vmem:[%s1244_s0 + $0x98] sm:$0xff] }
   0x3   :  { %v719_v7 = vpack.c.bf16 %v34_v4, %v33_v2  ;;  %v721_v8 = vpack.c.bf16 %v52_v6, %v51_v5  ;;  %v35_v9 = vld [vmem:[%s1244_s0 + $0x10] sm:$0xff]  ;;  %v36_v10 = vld [vmem:[%s1244_s0 + $0x18] sm:$0xff]  ;;  %v53_v11 = vld [vmem:[%s1244_s0 + $0xa0] sm:$0xff] }
   0x4   :  { %718 = vmatprep.subr.bf16.mxu0 %v717_v3  ;;  %v54_v12 = vld [vmem:[%s1244_s0 + $0xa8] sm:$0xff]  ;;  %v723_v13 = vpack.c.bf16 %v36_v10, %v35_v9  ;;  %v37_v15 = vld [vmem:[%s1244_s0 + $0x20] sm:$0xff]  ;;  %v55_v17 = vld [vmem:[%s1244_s0 + $0xb0] sm:$0xff] }
   0x5   :  { %720 = vmatpush3.bf16.msra.mxu0 %v719_v7  ;;  %v725_v14 = vpack.c.bf16 %v54_v12, %v53_v11  ;;  %v38_v16 = vld [vmem:[%s1244_s0 + $0x28] sm:$0xff]  ;;  %v56_v18 = vld [vmem:[%s1244_s0 + $0xb8] sm:$0xff]  ;;  %v39_v21 = vld [vmem:[%s1244_s0 + $0x30] sm:$0xff] }
   0x6   :  { %722 = vmatprep.subr.bf16.mxu0 %v721_v8  ;;  %v727_v19 = vpack.c.bf16 %v38_v16, %v37_v15  ;;  %v729_v20 = vpack.c.bf16 %v56_v18, %v55_v17  ;;  %v40_v22 = vld [vmem:[%s1244_s0 + $0x38] sm:$0xff]  ;;  %v57_v23 = vld [vmem:[%s1244_s0 + $0xc0] sm:$0xff]  ;;  %v58_v24 = vld [vmem:[%s1244_s0 + $0xc8] sm:$0xff] }
   0x7   :  { %v899_v25 = vld [vmem:[%s1245_s3 + $0x8] sm:$0xff]  ;;  %v731_v26 = vpack.c.bf16 %v40_v22, %v39_v21  ;;  %v733_v27 = vpack.c.bf16 %v58_v24, %v57_v23  ;;  %v41_v28 = vld [vmem:[%s1244_s0 + $0x40] sm:$0xff]  ;;  %v59_v30 = vld [vmem:[%s1244_s0 + $0xd0] sm:$0xff] }
   0x8   :  { %129 = vmatprep.mubr.f32.mxu0 %v899_v25  ;;  %v42_v29 = vld [vmem:[%s1244_s0 + $0x48] sm:$0xff]  ;;  %v60_v31 = vld [vmem:[%s1244_s0 + $0xd8] sm:$0xff]  ;;  %v43_v34 = vld [vmem:[%s1244_s0 + $0x50] sm:$0xff] }
   0x9   :  { %724 = vmatpush3.bf16.msra.mxu0 %v723_v13  ;;  %v735_v32 = vpack.c.bf16 %v42_v29, %v41_v28  ;;  %v737_v33 = vpack.c.bf16 %v60_v31, %v59_v30  ;;  %v44_v35 = vld [vmem:[%s1244_s0 + $0x58] sm:$0xff]  ;;  %v61_v36 = vld [vmem:[%s1244_s0 + $0xe0] sm:$0xff]  ;;  %v62_v37 = vld [vmem:[%s1244_s0 + $0xe8] sm:$0xff] }
   0xa   :  { %726 = vmatprep.subr.bf16.mxu0 %v725_v14  ;;  %v739_v38 = vpack.c.bf16 %v44_v35, %v43_v34  ;;  %v741_v39 = vpack.c.bf16 %v62_v37, %v61_v36  ;;  %v45_v40 = vld [vmem:[%s1244_s0 + $0x60] sm:$0xff]  ;;  %v46_v41 = vld [vmem:[%s1244_s0 + $0x68] sm:$0xff]  ;;  %v63_v42 = vld [vmem:[%s1244_s0 + $0xf0] sm:$0xff] }
   0xb   :  { %v64_v43 = vld [vmem:[%s1244_s0 + $0xf8] sm:$0xff]  ;;  %v743_v44 = vpack.c.bf16 %v46_v41, %v45_v40  ;;  %v47_v46 = vld [vmem:[%s1244_s0 + $0x70] sm:$0xff]  ;;  %v947_v49 = vld [vmem:[%s1245_s3] sm:$0xff] }
   0xc   :  { %v745_v45 = vpack.c.bf16 %v64_v43, %v63_v42  ;;  %v48_v47 = vld [vmem:[%s1244_s0 + $0x78] sm:$0xff]  ;;  %v959_v51 = vld [vmem:[%s1245_s3 + $0x10] sm:$0xff]  ;;  %v964_v52 = vld [vmem:[%s1245_s3 + $0x28] sm:$0xff] }
   0xd   :  { %728 = vmatpush3.bf16.msra.mxu0 %v727_v19  ;;  %v747_v48 = vpack.c.bf16 %v48_v47, %v47_v46  ;;  %v952_v50 = vld [vmem:[%s1245_s3 + $0x18] sm:$0xff]  ;;  %v971_v53 = vld [vmem:[%s1245_s3 + $0x20] sm:$0xff]  ;;  %v983_v55 = vld [vmem:[%s1245_s3 + $0x30] sm:$0xff] }
   0xe   :  { %730 = vmatprep.subr.bf16.mxu0 %v729_v20  ;;  %v976_v54 = vld [vmem:[%s1245_s3 + $0x38] sm:$0xff]  ;;  %v988_v56 = vld [vmem:[%s1245_s3 + $0x48] sm:$0xff]  ;;  %v995_v57 = vld [vmem:[%s1245_s3 + $0x40] sm:$0xff] }
   0xf   :  { %v1000_v58 = vld [vmem:[%s1245_s3 + $0x58] sm:$0xff]  ;;  %v1007_v59 = vld [vmem:[%s1245_s3 + $0x50] sm:$0xff]  ;;  %v1012_v60 = vld [vmem:[%s1245_s3 + $0x68] sm:$0xff] }
  0x10   :  { %v1019_v61 = vld [vmem:[%s1245_s3 + $0x60] sm:$0xff]  ;;  %v1024_v62 = vld [vmem:[%s1245_s3 + $0x78] sm:$0xff]  ;;  %v1031_v63 = vld [vmem:[%s1245_s3 + $0x70] sm:$0xff] }
  0x11   :  { %732 = vmatpush3.bf16.msra.mxu0 %v731_v26 }
  0x12   :  { %734 = vmatprep.subr.bf16.mxu0 %v733_v27 }
  0x15   :  { %736 = vmatpush3.bf16.msra.mxu0 %v735_v32 }
  0x16   :  { %738 = vmatprep.subr.bf16.mxu0 %v737_v33 }
  0x19   :  { %740 = vmatpush3.bf16.msra.mxu0 %v739_v38 }
  0x1a   :  { %742 = vmatprep.subr.bf16.mxu0 %v741_v39 }
  0x1d   :  { %744 = vmatpush3.bf16.msra.mxu0 %v743_v44 }
  0x1e   :  { %746 = vmatprep.subr.bf16.mxu0 %v745_v45 }
  0x21   :  { %748 = vmatpush3.bf16.msra.mxu0 %v747_v48 }
  0x24   :  { %130 = vmatmul.mubr.f32.vlgmr.msra.gmra.mrb[0].mxu0 %v947_v49 }
  0x25   :  { %134 = vmatprep.mubr.f32.mxu0 %v952_v50 }
  0x28   :  { %135 = vmatmul.mubr.f32.gmra.mrb[2].mxu0 %v959_v51 }
  0x29   :  { %139 = vmatprep.mubr.f32.mxu0 %v964_v52 }
  0x2c   :  { %140 = vmatmul.mubr.f32.gmra.mrb[4].mxu0 %v971_v53 }
  0x2d   :  { %144 = vmatprep.mubr.f32.mxu0 %v976_v54 }
  0x30   :  { %145 = vmatmul.mubr.f32.gmra.mrb[6].mxu0 %v983_v55 }
  0x31   :  { %149 = vmatprep.mubr.f32.mxu0 %v988_v56 }
  0x34   :  { %150 = vmatmul.mubr.f32.gmra.mrb[8].mxu0 %v995_v57 }
  0x35   :  { %154 = vmatprep.mubr.f32.mxu0 %v1000_v58 }
  0x38   :  { %155 = vmatmul.mubr.f32.gmra.mrb[10].mxu0 %v1007_v59 }
  0x39   :  { %159 = vmatprep.mubr.f32.mxu0 %v1012_v60 }
  0x3c   :  { %160 = vmatmul.mubr.f32.gmra.mrb[12].mxu0 %v1019_v61 }
  0x3d   :  { %164 = vmatprep.mubr.f32.mxu0 %v1024_v62 }
  0x40   :  { %165 = vmatmul.mubr.f32.gmra.mrb[14].mxu0 %v1031_v63 }
  0xf7   :  { %v637_v0 = vpop.f32.mrb[0].mxu0 }
  0xf8   :  { %v638_v1 = vpop.f32.mrb[1].mxu0 }
  0xf9   :  { %v639_v2 = vadd.f32 %v638_v1, %v637_v0 }
  0xfb   :  { %v640_v3 = vpop.f32.mrb[2].mxu0  ;;  %v171_v4 = vsel %vm170_vm0, %v639_v2, -inf }
  0xfc   :  { %v641_v5 = vpop.f32.mrb[3].mxu0  ;;  %172 = vmax.xlane.f32.xlu0 %v171_v4 }
  0xfd   :  { %v642_v6 = vadd.f32 %v641_v5, %v640_v3 }
  0xff   :  { %v643_v7 = vpop.f32.mrb[4].mxu0  ;;  %v174_v8 = vsel %vm170_vm0, %v642_v6, -inf }
 0x100   :  { %v644_v9 = vpop.f32.mrb[5].mxu0  ;;  %175 = vmax.xlane.f32.xlu0 %v174_v8 }
 0x101   :  { %v645_v10 = vadd.f32 %v644_v9, %v643_v7 }
 0x103   :  { %v646_v11 = vpop.f32.mrb[6].mxu0  ;;  %v177_v12 = vsel %vm170_vm0, %v645_v10, -inf }
 0x104   :  { %v647_v13 = vpop.f32.mrb[7].mxu0  ;;  %178 = vmax.xlane.f32.xlu1 %v177_v12 }
 0x105   :  { %v648_v14 = vadd.f32 %v647_v13, %v646_v11 }
 0x107   :  { %v649_v15 = vpop.f32.mrb[8].mxu0  ;;  %v180_v16 = vsel %vm170_vm0, %v648_v14, -inf }
 0x108   :  { %v650_v17 = vpop.f32.mrb[9].mxu0  ;;  %181 = vmax.xlane.f32.xlu1 %v180_v16 }
 0x109   :  { %v651_v18 = vadd.f32 %v650_v17, %v649_v15 }
 0x10b   :  { %v652_v19 = vpop.f32.mrb[10].mxu0  ;;  %v183_v20 = vsel %vm170_vm0, %v651_v18, -inf }
 0x10c   :  { %v653_v21 = vpop.f32.mrb[11].mxu0  ;;  %184 = vmax.xlane.f32.xlu0 %v183_v20 }
 0x10d   :  { %v654_v22 = vadd.f32 %v653_v21, %v652_v19 }
 0x10f   :  { %v655_v23 = vpop.f32.mrb[12].mxu0  ;;  %v186_v24 = vsel %vm170_vm0, %v654_v22, -inf }
 0x110   :  { %v656_v26 = vpop.f32.mrb[13].mxu0  ;;  %187 = vmax.xlane.f32.xlu1 %v186_v24 }
 0x111   :  { %v657_v27 = vadd.f32 %v656_v26, %v655_v23  ;;  %v259_v23 = vld [vmem:[%s1246_s1] sm:$0xff]  ;;  %v815_v26 = vmov 0.0  }
 0x112   :  { %349 = vmatprep.mubr.f32.mxu1 %v815_v26 }
 0x113   :  { %v658_v28 = vpop.f32.mrb[14].mxu0  ;;  %v189_v29 = vsel %vm170_vm0, %v657_v27, -inf }
 0x114   :  { %v659_v30 = vpop.f32.mrb[15].mxu0  ;;  %190 = vmax.xlane.f32.xlu0 %v189_v29 }
 0x115   :  { %v660_v31 = vadd.f32 %v659_v30, %v658_v28 }
 0x117   :  { %v192_v32 = vsel %vm170_vm0, %v660_v31, -inf }
 0x118   :  { %193 = vmax.xlane.f32.xlu1 %v192_v32 }
 0x189   :  { %v173_v33 = vpop.xlane.xlu0 %172 }
 0x18a   :  { %v195_v34 = vsub.f32 %v639_v2, %v173_v33 }
 0x18c   :  { %v203_v35 = vmul.f32 1.442695, %v195_v34 }
 0x18d   :  { %v176_v36 = vpop.xlane.xlu0 %175 }
 0x18e   :  { %783 = vpow2.f32 %v203_v35  ;;  %v196_v37 = vsub.f32 %v642_v6, %v176_v36 }
 0x190   :  { %v205_v38 = vmul.f32 1.442695, %v196_v37 }
 0x191   :  { %v179_v39 = vpop.xlane.xlu1 %178 }
 0x192   :  { %785 = vpow2.f32 %v205_v38  ;;  %v197_v40 = vsub.f32 %v645_v10, %v179_v39 }
 0x194   :  { %v207_v41 = vmul.f32 1.442695, %v197_v40 }
 0x195   :  { %v182_v42 = vpop.xlane.xlu1 %181 }
 0x196   :  { %787 = vpow2.f32 %v207_v41  ;;  %v198_v43 = vsub.f32 %v648_v14, %v182_v42 }
 0x198   :  { %v784_v44 = vpop.eup %783  ;;  %v209_v45 = vmul.f32 1.442695, %v198_v43 }
 0x199   :  { %v185_v46 = vpop.xlane.xlu0 %184  ;;  %v219_v47 = vsel %vm170_vm0, %v784_v44, 0.0 }
 0x19a   :  { %789 = vpow2.f32 %v209_v45  ;;  %v199_v48 = vsub.f32 %v651_v18, %v185_v46  ;;  %220 = vadd.xlane.f32.xlu0 %v219_v47  ;;  %v430_v46 = vld [vmem:[%s1247_s2 + $0x80] sm:$0xff]  ;;  %v431_v47 = vld [vmem:[%s1247_s2 + $0x88] sm:$0xff] }
 0x19c   :  { %v786_v0 = vpop.eup %785  ;;  %v211_v1 = vmul.f32 1.442695, %v199_v48  ;;  %v414_v48 = vld [vmem:[%s1247_s2] sm:$0xff] }
 0x19d   :  { %v188_v2 = vpop.xlane.xlu1 %187  ;;  %v222_v3 = vsel %vm170_vm0, %v786_v0, 0.0 }
 0x19e   :  { %791 = vpow2.f32 %v211_v1  ;;  %v200_v4 = vsub.f32 %v654_v22, %v188_v2  ;;  %223 = vadd.xlane.f32.xlu1 %v222_v3  ;;  %v260_v22 = vld [vmem:[%s1246_s1 + $0x8] sm:$0xff]  ;;  %s816_s1 = smov 32   ;;  %v432_v2 = vld [vmem:[%s1247_s2 + $0x90] sm:$0xff]  ;;  %v433_v3 = vld [vmem:[%s1247_s2 + $0x98] sm:$0xff] }
 0x19f   :  { %285 = vmatprep.subr.mxu1 %v260_v22  ;;  %v415_v1 = vld [vmem:[%s1247_s2 + $0x8] sm:$0xff]  ;;  %v420_v22 = vld [vmem:[%s1247_s2 + $0x30] sm:$0xff] }
 0x1a0   :  { %v788_v5 = vpop.eup %787  ;;  %v213_v6 = vmul.f32 1.442695, %v200_v4  ;;  %286 = vmatpush1.msra.mxu1 %v259_v23 }
 0x1a1   :  { %v191_v7 = vpop.xlane.xlu0 %190  ;;  %v225_v8 = vsel %vm170_vm0, %v788_v5, 0.0 }
 0x1a2   :  { %793 = vpow2.f32 %v213_v6  ;;  %v201_v9 = vsub.f32 %v657_v27, %v191_v7  ;;  %226 = vadd.xlane.f32.xlu0 %v225_v8  ;;  %v753_v6 = vpack.c.bf16 %v433_v3, %v432_v2  ;;  %v416_v7 = vld [vmem:[%s1247_s2 + $0x10] sm:$0xff]  ;;  %v417_v8 = vld [vmem:[%s1247_s2 + $0x18] sm:$0xff] }
 0x1a4   :  { %v790_v10 = vpop.eup %789  ;;  %v215_v11 = vmul.f32 1.442695, %v201_v9 }
 0x1a5   :  { %v194_v12 = vpop.xlane.xlu1 %193  ;;  %v228_v13 = vsel %vm170_vm0, %v790_v10, 0.0 }
 0x1a6   :  { %795 = vpow2.f32 %v215_v11  ;;  %v202_v14 = vsub.f32 %v660_v31, %v194_v12  ;;  %229 = vadd.xlane.f32.xlu1 %v228_v13  ;;  %v435_v11 = vld [vmem:[%s1247_s2 + $0xa8] sm:$0xff]  ;;  %v755_v12 = vpack.c.bf16 %v417_v8, %v416_v7  ;;  %v418_v13 = vld [vmem:[%s1247_s2 + $0x20] sm:$0xff] }
 0x1a8   :  { %v792_v15 = vpop.eup %791  ;;  %v217_v16 = vmul.f32 1.442695, %v202_v14  ;;  %v419_v14 = vld [vmem:[%s1247_s2 + $0x28] sm:$0xff] }
 0x1a9   :  { %v231_v17 = vsel %vm170_vm0, %v792_v15, 0.0 }
 0x1aa   :  { %797 = vpow2.f32 %v217_v16  ;;  %232 = vadd.xlane.f32.xlu0 %v231_v17 }
 0x1ac   :  { %v1047_v18 = vpop.eup %793 }
 0x1ad   :  { %v234_v19 = vsel %vm170_vm0, %v1047_v18, 0.0 }
 0x1ae   :  { %235 = vadd.xlane.f32.xlu1 %v234_v19  ;;  %v437_v19 = vld [vmem:[%s1247_s2 + $0xb8] sm:$0xff] }
 0x1b0   :  { %v1051_v20 = vpop.eup %795 }
 0x1b1   :  { %v237_v21 = vsel %vm170_vm0, %v1051_v20, 0.0 }
 0x1b2   :  { %238 = vadd.xlane.f32.xlu0 %v237_v21  ;;  %v759_v21 = vpack.c.bf16 %v419_v14, %v418_v13 }
 0x1b4   :  { %v1061_v24 = vpop.eup %797 }
 0x1b5   :  { %v240_v27 = vsel %vm170_vm0, %v1061_v24, 0.0 }
 0x1b6   :  { %241 = vadd.xlane.f32.xlu1 %v240_v27 }
 0x227   :  { %v221_v28 = vpop.xlane.xlu0 %220 }
 0x228   :  { %799 = vrcp.f32 %v221_v28  ;;  %v438_v28 = vld [vmem:[%s1247_s2 + $0xc0] sm:$0xff] }
 0x22b   :  { %v224_v29 = vpop.xlane.xlu1 %223 }
 0x22c   :  { %801 = vrcp.f32 %v224_v29  ;;  %v439_v29 = vld [vmem:[%s1247_s2 + $0xc8] sm:$0xff] }
 0x22f   :  { %v227_v30 = vpop.xlane.xlu0 %226 }
 0x230   :  { %803 = vrcp.f32 %v227_v30 }
 0x232   :  { %v800_v31 = vpop.eup %799 }
 0x233   :  { %v230_v32 = vpop.xlane.xlu1 %229  ;;  %v251_v33 = vmul.f32 %v800_v31, %v784_v44 }
 0x234   :  { %805 = vrcp.f32 %v230_v32  ;;  %v765_v32 = vpack.c.bf16 %v439_v29, %v438_v28 }
 0x235   :  { %551 = vrot.lane.b32.xlu0 %v251_v33, %s816_s1  ;;  %597 = vmatmul.mubr.msk.f32.vlgmr.msra.gmra.mrb[0].mxu1 %vm170_vm0, %v251_v33  ;;  %v423_v33 = vld [vmem:[%s1247_s2 + $0x48] sm:$0xff] }
 0x236   :  { %v802_v34 = vpop.eup %801  ;;  %355 = vmatprep.mubr.f32.mxu1 %v815_v26 }
 0x237   :  { %v233_v35 = vpop.xlane.xlu0 %232  ;;  %v252_v36 = vmul.f32 %v802_v34, %v786_v0  ;;  %v749_v0 = vpack.c.bf16 %v431_v47, %v430_v46  ;;  %v441_v34 = vld [vmem:[%s1247_s2 + $0xd8] sm:$0xff]  ;;  %v444_v46 = vld [vmem:[%s1247_s2 + $0xf0] sm:$0xff] }
 0x238   :  { %807 = vrcp.f32 %v233_v35  ;;  %v445_v47 = vld [vmem:[%s1247_s2 + $0xf8] sm:$0xff] }
 0x239   :  { %553 = vrot.lane.b32.xlu1 %v252_v36, %s816_s1  ;;  %598 = vmatmul.mubr.msk.f32.gmra.mrb[2].mxu1 %vm170_vm0, %v252_v36 }
 0x23a   :  { %v804_v37 = vpop.eup %803  ;;  %361 = vmatprep.mubr.f32.mxu1 %v815_v26  ;;  %750 = vmatprep.subr.bf16.mxu1 %v749_v0  ;;  %v428_v0 = vld [vmem:[%s1247_s2 + $0x70] sm:$0xff] }
 0x23b   :  { %v236_v38 = vpop.xlane.xlu1 %235  ;;  %v253_v39 = vmul.f32 %v804_v37, %v788_v5  ;;  %v751_v5 = vpack.c.bf16 %v415_v1, %v414_v48  ;;  %v424_v37 = vld [vmem:[%s1247_s2 + $0x50] sm:$0xff]  ;;  %v777_v48 = vpack.c.bf16 %v445_v47, %v444_v46  ;;  %v429_v1 = vld [vmem:[%s1247_s2 + $0x78] sm:$0xff] }
 0x23c   :  { %809 = vrcp.f32 %v236_v38  ;;  %v425_v38 = vld [vmem:[%s1247_s2 + $0x58] sm:$0xff]  ;;  %v779_v2 = vpack.c.bf16 %v429_v1, %v428_v0 }
 0x23d   :  { %555 = vrot.lane.b32.xlu1 %v253_v39, %s816_s1  ;;  %599 = vmatmul.mubr.msk.f32.gmra.mrb[4].mxu1 %vm170_vm0, %v253_v39  ;;  %v442_v39 = vld [vmem:[%s1247_s2 + $0xe0] sm:$0xff] }
 0x23e   :  { %v806_v40 = vpop.eup %805  ;;  %367 = vmatprep.mubr.f32.mxu1 %v815_v26  ;;  %752 = vmatpush3.bf16.msra.mxu1 %v751_v5 }
 0x23f   :  { %v239_v41 = vpop.xlane.xlu0 %238  ;;  %v254_v42 = vmul.f32 %v806_v40, %v790_v10  ;;  %v434_v10 = vld [vmem:[%s1247_s2 + $0xa0] sm:$0xff]  ;;  %754 = vmatprep.subr.bf16.mxu1 %v753_v6  ;;  %v443_v40 = vld [vmem:[%s1247_s2 + $0xe8] sm:$0xff] }
 0x240   :  { %811 = vrcp.f32 %v239_v41  ;;  %v757_v16 = vpack.c.bf16 %v435_v11, %v434_v10  ;;  %v771_v41 = vpack.c.bf16 %v425_v38, %v424_v37 }
 0x241   :  { %557 = vrot.lane.b32.xlu1 %v254_v42, %s816_s1  ;;  %600 = vmatmul.mubr.msk.f32.gmra.mrb[6].mxu1 %vm170_vm0, %v254_v42  ;;  %v773_v42 = vpack.c.bf16 %v443_v40, %v442_v39 }
 0x242   :  { %v808_v43 = vpop.eup %807  ;;  %373 = vmatprep.mubr.f32.mxu1 %v815_v26  ;;  %756 = vmatpush3.bf16.msra.mxu1 %v755_v12 }
 0x243   :  { %v242_v44 = vpop.xlane.xlu1 %241  ;;  %v255_v45 = vmul.f32 %v808_v43, %v792_v15  ;;  %758 = vmatprep.subr.bf16.mxu1 %v757_v16  ;;  %v426_v43 = vld [vmem:[%s1247_s2 + $0x60] sm:$0xff] }
 0x244   :  { %813 = vrcp.f32 %v242_v44  ;;  %v427_v44 = vld [vmem:[%s1247_s2 + $0x68] sm:$0xff] }
 0x245   :  { %559 = vrot.lane.b32.xlu0 %v255_v45, %s816_s1  ;;  %601 = vmatmul.mubr.msk.f32.gmra.mrb[8].mxu1 %vm170_vm0, %v255_v45  ;;  %v775_v45 = vpack.c.bf16 %v427_v44, %v426_v43 }
 0x246   :  { %v810_v4 = vpop.eup %809  ;;  %379 = vmatprep.mubr.f32.mxu1 %v815_v26  ;;  %760 = vmatpush3.bf16.msra.mxu1 %v759_v21 }
 0x247   :  { %v256_v9 = vmul.f32 %v810_v4, %v1047_v18  ;;  %v436_v18 = vld [vmem:[%s1247_s2 + $0xb0] sm:$0xff] }
 0x248   :  { %v761_v27 = vpack.c.bf16 %v437_v19, %v436_v18 }
 0x249   :  { %561 = vrot.lane.b32.xlu1 %v256_v9, %s816_s1  ;;  %602 = vmatmul.mubr.msk.f32.gmra.mrb[10].mxu1 %vm170_vm0, %v256_v9 }
 0x24a   :  { %v812_v15 = vpop.eup %811  ;;  %385 = vmatprep.mubr.f32.mxu1 %v815_v26  ;;  %762 = vmatprep.subr.bf16.mxu1 %v761_v27 }
 0x24b   :  { %v257_v17 = vmul.f32 %v812_v15, %v1051_v20  ;;  %v421_v20 = vld [vmem:[%s1247_s2 + $0x38] sm:$0xff] }
 0x24c   :  { %v763_v31 = vpack.c.bf16 %v421_v20, %v420_v22 }
 0x24d   :  { %563 = vrot.lane.b32.xlu0 %v257_v17, %s816_s1  ;;  %603 = vmatmul.mubr.msk.f32.gmra.mrb[12].mxu1 %vm170_vm0, %v257_v17 }
 0x24e   :  { %v814_v23 = vpop.eup %813  ;;  %391 = vmatprep.mubr.f32.mxu1 %v815_v26  ;;  %v422_v26 = vld [vmem:[%s1247_s2 + $0x40] sm:$0xff]  ;;  %764 = vmatpush3.bf16.msra.mxu1 %v763_v31 }
 0x24f   :  { %v258_v30 = vmul.f32 %v814_v23, %v1061_v24  ;;  %v440_v24 = vld [vmem:[%s1247_s2 + $0xd0] sm:$0xff]  ;;  %v767_v35 = vpack.c.bf16 %v423_v33, %v422_v26  ;;  %766 = vmatprep.subr.bf16.mxu1 %v765_v32 }
 0x250   :  { %v769_v36 = vpack.c.bf16 %v441_v34, %v440_v24 }
 0x251   :  { %565 = vrot.lane.b32.xlu1 %v258_v30, %s816_s1  ;;  %604 = vmatmul.mubr.msk.f32.gmra.mrb[14].mxu1 %vm170_vm0, %v258_v30 }
 0x252   :  { %768 = vmatpush3.bf16.msra.mxu1 %v767_v35 }
 0x253   :  { %770 = vmatprep.subr.bf16.mxu1 %v769_v36 }
 0x256   :  { %772 = vmatpush3.bf16.msra.mxu1 %v771_v41 }
 0x257   :  { %774 = vmatprep.subr.bf16.mxu1 %v773_v42 }
 0x25a   :  { %776 = vmatpush3.bf16.msra.mxu1 %v775_v45 }
 0x25b   :  { %778 = vmatprep.subr.bf16.mxu1 %v777_v48 }
 0x25e   :  { %780 = vmatpush3.bf16.msra.mxu1 %v779_v2 }
 0x2a7   :  { %v552_v29 = vpop.permute.xlu0 %551 }
 0x2ab   :  { %v554_v30 = vpop.permute.xlu1 %553 }
 0x2af   :  { %v556_v26 = vpop.permute.xlu1 %555 }
 0x2b3   :  { %v558_v38 = vpop.permute.xlu1 %557 }
 0x2b7   :  { %v560_v43 = vpop.permute.xlu0 %559 }
 0x2bb   :  { %v562_v48 = vpop.permute.xlu1 %561 }
 0x308   :  { %v351_v3 = vpop.f32.mrb[0].mxu1 }
 0x309   :  { %v353_v4 = vpop.f32.mrb[1].mxu1  ;;  %v398_v6 = vmul.f32 %v351_v3, %v947_v49 }
 0x30a   :  { %v399_v5 = vmul.f32 %v353_v4, %v899_v25  ;;  %v564_v4 = vpop.permute.xlu0 %563 }
 0x30c   :  { %v357_v7 = vpop.f32.mrb[2].mxu1  ;;  %510 = vmatprep.mubr.f32.mxu1 %v399_v5 }
 0x30d   :  { %v359_v8 = vpop.f32.mrb[3].mxu1  ;;  %511 = vmatmul.mubr.f32.vlgmr.msra.gmra.mrb[16].mxu1 %v398_v6  ;;  %v400_v10 = vmul.f32 %v357_v7, %v959_v51 }
 0x30e   :  { %v401_v9 = vmul.f32 %v359_v8, %v952_v50 }
 0x310   :  { %v363_v11 = vpop.f32.mrb[4].mxu1  ;;  %515 = vmatprep.mubr.f32.mxu1 %v401_v9  ;;  %v566_v9 = vpop.permute.xlu1 %565 }
 0x311   :  { %v365_v12 = vpop.f32.mrb[5].mxu1  ;;  %516 = vmatmul.mubr.f32.gmra.mrb[18].mxu1 %v400_v10  ;;  %v402_v14 = vmul.f32 %v363_v11, %v971_v53 }
 0x312   :  { %v403_v13 = vmul.f32 %v365_v12, %v964_v52 }
 0x314   :  { %v369_v15 = vpop.f32.mrb[6].mxu1  ;;  %520 = vmatprep.mubr.f32.mxu1 %v403_v13 }
 0x315   :  { %v371_v25 = vpop.f32.mrb[7].mxu1  ;;  %521 = vmatmul.mubr.f32.gmra.mrb[20].mxu1 %v402_v14  ;;  %v404_v16 = vmul.f32 %v369_v15, %v983_v55 }
 0x316   :  { %v405_v49 = vmul.f32 %v371_v25, %v976_v54 }
 0x318   :  { %v375_v17 = vpop.f32.mrb[8].mxu1  ;;  %525 = vmatprep.mubr.f32.mxu1 %v405_v49 }
 0x319   :  { %v377_v50 = vpop.f32.mrb[9].mxu1  ;;  %526 = vmatmul.mubr.f32.gmra.mrb[22].mxu1 %v404_v16  ;;  %v406_v18 = vmul.f32 %v375_v17, %v995_v57 }
 0x31a   :  { %v407_v51 = vmul.f32 %v377_v50, %v988_v56 }
 0x31c   :  { %v381_v19 = vpop.f32.mrb[10].mxu1  ;;  %530 = vmatprep.mubr.f32.mxu1 %v407_v51 }
 0x31d   :  { %v383_v52 = vpop.f32.mrb[11].mxu1  ;;  %531 = vmatmul.mubr.f32.gmra.mrb[24].mxu1 %v406_v18  ;;  %v408_v21 = vmul.f32 %v381_v19, %v1007_v59 }
 0x31e   :  { %v409_v53 = vmul.f32 %v383_v52, %v1000_v58 }
 0x320   :  { %v387_v22 = vpop.f32.mrb[12].mxu1  ;;  %535 = vmatprep.mubr.f32.mxu1 %v409_v53 }
 0x321   :  { %v389_v54 = vpop.f32.mrb[13].mxu1  ;;  %536 = vmatmul.mubr.f32.gmra.mrb[26].mxu1 %v408_v21  ;;  %v410_v20 = vmul.f32 %v387_v22, %v1019_v61 }
 0x322   :  { %v411_v55 = vmul.f32 %v389_v54, %v1012_v60 }
 0x324   :  { %v393_v23 = vpop.f32.mrb[14].mxu1  ;;  %540 = vmatprep.mubr.f32.mxu1 %v411_v55 }
 0x325   :  { %v395_v56 = vpop.f32.mrb[15].mxu1  ;;  %541 = vmatmul.mubr.f32.gmra.mrb[28].mxu1 %v410_v20  ;;  %v412_v27 = vmul.f32 %v393_v23, %v1031_v63 }
 0x326   :  { %v413_v57 = vmul.f32 %v395_v56, %v1024_v62 }
 0x328   :  { %545 = vmatprep.mubr.f32.mxu1 %v413_v57 }
 0x329   :  { %546 = vmatmul.mubr.f32.gmra.mrb[30].mxu1 %v412_v27 }
 0x3e0   :  { %v693_v58 = vpop.f32.mrb[16].mxu1 }
 0x3e1   :  { %v694_v59 = vpop.f32.mrb[17].mxu1 }
 0x3e2   :  { %v695_v28 = vadd.f32 %v694_v59, %v693_v58 }
 0x3e4   :  { %v576_v60 = vsel %vm575_vm1, %v695_v28, %v552_v29  ;;  %v696_v61 = vpop.f32.mrb[18].mxu1 }
 0x3e5   :  { %585 = vst.msk [vmem:[%s1248_s4] sm:$0xff] %vm584_vm2, %v576_v60  ;;  %v697_v62 = vpop.f32.mrb[19].mxu1 }
 0x3e6   :  { %v698_v31 = vadd.f32 %v697_v62, %v696_v61 }
 0x3e8   :  { %v577_v63 = vsel %vm575_vm1, %v698_v31, %v554_v30  ;;  %v699_v32 = vpop.f32.mrb[20].mxu1 }
 0x3e9   :  { %586 = vst.msk [vmem:[%s1248_s4 + $0x8] sm:$0xff] %vm584_vm2, %v577_v63  ;;  %v700_v33 = vpop.f32.mrb[21].mxu1 }
 0x3ea   :  { %v701_v24 = vadd.f32 %v700_v33, %v699_v32 }
 0x3ec   :  { %v578_v34 = vsel %vm575_vm1, %v701_v24, %v556_v26  ;;  %v702_v35 = vpop.f32.mrb[22].mxu1 }
 0x3ed   :  { %587 = vst.msk [vmem:[%s1248_s4 + $0x10] sm:$0xff] %vm584_vm2, %v578_v34  ;;  %v703_v36 = vpop.f32.mrb[23].mxu1 }
 0x3ee   :  { %v704_v37 = vadd.f32 %v703_v36, %v702_v35 }
 0x3f0   :  { %v579_v39 = vsel %vm575_vm1, %v704_v37, %v558_v38  ;;  %v705_v40 = vpop.f32.mrb[24].mxu1 }
 0x3f1   :  { %588 = vst.msk [vmem:[%s1248_s4 + $0x18] sm:$0xff] %vm584_vm2, %v579_v39  ;;  %v706_v41 = vpop.f32.mrb[25].mxu1 }
 0x3f2   :  { %v707_v42 = vadd.f32 %v706_v41, %v705_v40 }
 0x3f4   :  { %v580_v44 = vsel %vm575_vm1, %v707_v42, %v560_v43  ;;  %v708_v45 = vpop.f32.mrb[26].mxu1 }
 0x3f5   :  { %589 = vst.msk [vmem:[%s1248_s4 + $0x20] sm:$0xff] %vm584_vm2, %v580_v44  ;;  %v709_v46 = vpop.f32.mrb[27].mxu1 }
 0x3f6   :  { %v710_v47 = vadd.f32 %v709_v46, %v708_v45 }
 0x3f8   :  { %v581_v0 = vsel %vm575_vm1, %v710_v47, %v562_v48  ;;  %v711_v1 = vpop.f32.mrb[28].mxu1 }
 0x3f9   :  { %590 = vst.msk [vmem:[%s1248_s4 + $0x28] sm:$0xff] %vm584_vm2, %v581_v0  ;;  %v712_v2 = vpop.f32.mrb[29].mxu1 }
 0x3fa   :  { %v713_v3 = vadd.f32 %v712_v2, %v711_v1 }
 0x3fc   :  { %v582_v5 = vsel %vm575_vm1, %v713_v3, %v564_v4  ;;  %v714_v6 = vpop.f32.mrb[30].mxu1 }
 0x3fd   :  { %591 = vst.msk [vmem:[%s1248_s4 + $0x30] sm:$0xff] %vm584_vm2, %v582_v5  ;;  %v715_v7 = vpop.f32.mrb[31].mxu1 }
 0x3fe   :  { %v716_v8 = vadd.f32 %v715_v7, %v714_v6 }
 0x400   :  { %v583_v10 = vsel %vm575_vm1, %v716_v8, %v566_v9 }
 0x401   :  { %592 = vst.msk [vmem:[%s1248_s4 + $0x38] sm:$0xff] %vm584_vm2, %v583_v10 }

</bundles_post_ra>
